<compile_context>
chip_gen: v7x
topology: tpu7x:2x2x1
jax: 0.10.0
libtpu: 0.0.40
codegen_flags: <defaults>
</compile_context>

<pallas_src>
import jax
import jax.numpy as jnp
from jax.experimental import pallas as pl
from jax.experimental.pallas import tpu as pltpu


def _round_up(n, m):
    return ((n + m - 1) // m) * m


def _cdiv(a, b):
    return (a + b - 1) // b


def _spec(block_shape, index_map, *, buffers=None):
    """BlockSpec helper; buffers=1 single-buffers a grid-invariant operand."""
    if buffers is None:
        return pl.BlockSpec(block_shape, index_map)
    try:
        return pl.BlockSpec(block_shape, index_map,
                            pipeline_mode=pl.Buffered(buffers))
    except (TypeError, AttributeError):
        # Older jax without pipeline_mode: fall back to default double-buffering.
        return pl.BlockSpec(block_shape, index_map)


def _silu_f32(h):
    # sigmoid(h) = 0.5*tanh(0.5*h) + 0.5 -> one EUP push + VALU fmas, stable.
    return h * (0.5 * jnp.tanh(0.5 * h) + 0.5)


# ----------------------- resident-weight kernel (W1, W2 live in VMEM) ---------

def _gauge_kernel_resident(x_ref, w1_ref, b1_ref, w2_ref, b2_ref, o_ref):
    """out = x + (SiLU(x @ W1 + b1) @ W2 + b2) for one row tile."""
    x = x_ref[...]                                   # (tm, H) streamed dtype
    xw = x if x.dtype == w1_ref.dtype else x.astype(w1_ref.dtype)

    h = jnp.dot(xw, w1_ref[...], preferred_element_type=jnp.float32) + b1_ref[...]
    h = _silu_f32(h)

    y = jnp.dot(h.astype(w2_ref.dtype), w2_ref[...],
                preferred_element_type=jnp.float32) + b2_ref[...]
    o_ref[...] = (x.astype(jnp.float32) + y).astype(o_ref.dtype)


# ----------------------- hidden-dim-tiled fallback (very large H) -------------

def _gauge_kernel_ktiled(x_ref, w1_ref, b1_ref, w2_ref, b2_ref, o_ref, acc_ref):
    """Grid = (row tiles, k tiles) over the hidden dim.

    Per k step: h_k = SiLU(x @ W1[:, k] + b1[k]);  acc += h_k @ W2[k, :].
    acc (f32 VMEM scratch) is initialised with the residual x + b2 at k == 0 and
    written to the output on the last k step.
    """
    k = pl.program_id(1)
    x = x_ref[...]                                   # (tm, H), fetched once per row tile

    @pl.when(k == 0)
    def _():
        acc_ref[...] = x.astype(jnp.float32) + b2_ref[...]

    xw = x if x.dtype == w1_ref.dtype else x.astype(w1_ref.dtype)
    h = jnp.dot(xw, w1_ref[...], preferred_element_type=jnp.float32) + b1_ref[...]
    h = _silu_f32(h)
    acc_ref[...] += jnp.dot(h.astype(w2_ref.dtype), w2_ref[...],
                            preferred_element_type=jnp.float32)

    @pl.when(k == pl.num_programs(1) - 1)
    def _():
        o_ref[...] = acc_ref[...].astype(o_ref.dtype)


# ----------------------- VMEM budgeting ---------------------------------------

def _vmem_budget_bytes():
    """Per-generation VMEM budget: physical capacity minus headroom for Mosaic
    internal scratch / pipeline metadata (v7x: ~56 MiB, v6e/v5e: ~112 MiB)."""
    try:
        cap = int(pltpu.get_tpu_info().vmem_capacity_bytes)
    except Exception:
        cap = 64 << 20       # conservative fallback: v7x per-TensorCore VMEM
    return cap - max(8 << 20, cap // 8)


def _est_resident(tm, H, xb, ob, wb):
    return (2 * tm * H * xb          # x tile, double-buffered
            + 2 * tm * H * ob        # out tile, double-buffered
            + 2 * H * H * wb         # W1 + W2, single-buffered (grid-invariant)
            + 2 * 8 * H * 4          # b1 + b2 (sublane-padded), single-buffered
            + 4 * tm * H * 4)        # f32 intermediates (h, silu, y, casts)


def _est_ktiled(tm, tk, H, xb, ob, wb):
    return (2 * tm * H * xb + 2 * tm * H * ob
            + 2 * H * tk * wb + 2 * tk * H * wb   # W1 col-tile + W2 row-tile, 2 bufs
            + 2 * 8 * tk * 4 + 8 * H * 4          # b1 tile (2 bufs) + b2 (1 buf)
            + tm * H * 4                           # f32 accumulator scratch
            + 4 * tm * tk * 4)                     # f32 intermediates


# ----------------------- host-side wrapper ------------------------------------

def prepare_gauge_params(w1, b1, w2, b2, weight_dtype=jnp.bfloat16):
    """Weights -> bf16 [in, out] for the MXU (transpose PyTorch's [out, in] before
    calling); biases -> f32 [1, H].
    # TODO(synk): optional fp8 weight path (per-output-channel scale folded into
    # the bias) for the v7x MXU; numerics-dependent, keep behind a flag.
    """
    return (w1.astype(weight_dtype), b1.astype(jnp.float32).reshape(1, -1),
            w2.astype(weight_dtype), b2.astype(jnp.float32).reshape(1, -1))


def gauge_layer(x, w1, b1, w2, b2, *, tm=None, k_tile=None, donate_x=False):
    """GaugeLayer forward: out = x + (SiLU(x @ W1 + b1) @ W2 + b2).

    x  : [..., H]  activations (bf16 recommended for streaming)
    w1 : [H, H]    (in, out) layout, ideally bf16 (see prepare_gauge_params)
    w2 : [H, H]
    b1 : [1, H]    f32
    b2 : [1, H]    f32
    k_tile: force the hidden-dim-tiled fallback with this k tile (multiple of 128).
    donate_x: alias the output onto x's buffer (caller must not reuse x).
    """
    *lead, H = x.shape
    assert w1.shape == (H, H) and w2.shape == (H, H)
    assert b1.shape == (1, H) and b2.shape == (1, H)

    x2 = x.reshape(-1, H)
    M = x2.shape[0]

    # Lane-align H (multiple of 128).  For production, pre-pad the params once;
    # this per-call pad only triggers for non-aligned hid_dim (e.g. the module's
    # default hid_dim=64).
    Hp = max(128, _round_up(H, 128))
    if Hp != H:
        p = Hp - H
        x2 = jnp.pad(x2, ((0, 0), (0, p)))
        w1 = jnp.pad(w1, ((0, p), (0, p)))
        w2 = jnp.pad(w2, ((0, p), (0, p)))
        b1 = jnp.pad(b1, ((0, 0), (0, p)))
        b2 = jnp.pad(b2, ((0, 0), (0, p)))

    xb = jnp.dtype(x2.dtype).itemsize
    ob = xb
    wb = jnp.dtype(w1.dtype).itemsize
    budget = _vmem_budget_bytes()
    row_cap = _round_up(M, 8)

    def pick_tm(est_fn):
        for cand in (512, 256, 128, 64, 32, 16, 8):
            t = min(cand, row_cap)
            if est_fn(t) <= budget:
                return t
        return None

    # Path selection: resident weights whenever single-buffered bf16 W1+W2 (plus
    # the streaming tiles) fit the per-generation VMEM budget.
    if k_tile is None:
        tm_sel = tm if tm is not None else pick_tm(
            lambda t: _est_resident(t, Hp, xb, ob, wb))
        use_ktiled = tm_sel is None
    else:
        use_ktiled = True
        tm_sel = tm

    if use_ktiled:
        if k_tile is None:
            k_tile = next(tk for tk in (512, 256, 128) if Hp % tk == 0)
        assert k_tile % 128 == 0 and Hp % k_tile == 0
        if tm_sel is None:
            tm_sel = pick_tm(lambda t: _est_ktiled(t, k_tile, Hp, xb, ob, wb))
        if tm_sel is None:
            tm_sel = 8

    tm_use = max(8, _round_up(min(tm_sel, row_cap), 8))
    # v7x has 2 TensorCores: give the "parallel" row axis at least 2 steps for
    # small-M calls so both cores get work (one extra grid step is ~0.35 us).
    if M > 8 and _cdiv(M, tm_use) < 2:
        tm_use = max(8, _round_up(_cdiv(M, 2), 8))
    grid_rows = _cdiv(M, tm_use)

    est = (_est_ktiled(tm_use, k_tile, Hp, xb, ob, wb) if use_ktiled
           else _est_resident(tm_use, Hp, xb, ob, wb))
    # Always set the scoped-VMEM limit explicitly (v5e's default is only 16 MiB),
    # with margin over the estimate, capped at the per-generation budget.
    vmem_limit = int(min(budget, max(est * 3 // 2, 32 << 20)))

    w_reads = (grid_rows if use_ktiled else 1) * 2 * Hp * Hp * wb
    cost = pl.CostEstimate(
        flops=4 * M * Hp * Hp,               # two H x H matmuls per row
        transcendentals=M * Hp,              # one tanh per intermediate element
        bytes_accessed=M * Hp * (xb + ob) + w_reads + 2 * Hp * 4)

    out_shape = jax.ShapeDtypeStruct((M, Hp), x2.dtype)
    io_alias = {0: 0} if donate_x else {}

    if not use_ktiled:
        grid_spec = pltpu.PrefetchScalarGridSpec(
            num_scalar_prefetch=0,
            grid=(grid_rows,),
            in_specs=[
                _spec((tm_use, Hp), lambda i: (i, 0)),             # x row tile
                _spec((Hp, Hp), lambda i: (0, 0), buffers=1),      # W1 (resident)
                _spec((1, Hp), lambda i: (0, 0), buffers=1),       # b1
                _spec((Hp, Hp), lambda i: (0, 0), buffers=1),      # W2 (resident)
                _spec((1, Hp), lambda i: (0, 0), buffers=1),       # b2
            ],
            out_specs=_spec((tm_use, Hp), lambda i: (i, 0)),
        )
        kernel = _gauge_kernel_resident
        dims = ("parallel",)
    else:
        nk = Hp // k_tile
        grid_spec = pltpu.PrefetchScalarGridSpec(
            num_scalar_prefetch=0,
            grid=(grid_rows, nk),
            in_specs=[
                _spec((tm_use, Hp), lambda i, k: (i, 0)),          # x (once per row tile)
                _spec((Hp, k_tile), lambda i, k: (0, k)),          # W1 column tile
                _spec((1, k_tile), lambda i, k: (0, k)),           # b1 tile
                _spec((k_tile, Hp), lambda i, k: (k, 0)),          # W2 row tile
                _spec((1, Hp), lambda i, k: (0, 0), buffers=1),    # b2
            ],
            out_specs=_spec((tm_use, Hp), lambda i, k: (i, 0)),
            scratch_shapes=[pltpu.VMEM((tm_use, Hp), jnp.float32)],
        )
        kernel = _gauge_kernel_ktiled
        dims = ("parallel", "arbitrary")

    out = pl.pallas_call(
        kernel,
        out_shape=out_shape,
        grid_spec=grid_spec,
        input_output_aliases=io_alias,
        cost_estimate=cost,
        compiler_params=pltpu.CompilerParams(
            dimension_semantics=dims,
            vmem_limit_bytes=vmem_limit,
        ),
    )(x2, w1, b1, w2, b2)

    if Hp != H:
        out = out[:, :H]
    return out.reshape(*lead, H)


def gauge_layer_ref(x, w1, b1, w2, b2):
    h = x @ w1 + b1
    return x + (h * jax.nn.sigmoid(h)) @ w2 + b2


if __name__ == "__main__":
    # Small, lane-aligned demo shape (the module's default hid_dim=64 also works:
    # the wrapper pads H to 128, but 256 is representative of production shapes).
    hid_dim = 256
    batch, seq = 2, 8
    M = batch * seq

    key = jax.random.PRNGKey(0)
    kx, k1, kb1, k2, kb2 = jax.random.split(key, 5)
    bound = 1.0 / float(jnp.sqrt(hid_dim))

    x = jax.random.normal(kx, (batch, seq, hid_dim), dtype=jnp.float32)
    w1 = jax.random.uniform(k1, (hid_dim, hid_dim), jnp.float32, -bound, bound)
    b1 = jax.random.uniform(kb1, (1, hid_dim), jnp.float32, -bound, bound)
    w2 = jax.random.uniform(k2, (hid_dim, hid_dim), jnp.float32, -bound, bound)
    b2 = jax.random.uniform(kb2, (1, hid_dim), jnp.float32, -bound, bound)

    w1_k, b1_k, w2_k, b2_k = prepare_gauge_params(w1, b1, w2, b2)

    # Recommended streaming dtype: bf16 activations (no in-kernel MXU-operand cast,
    # half the HBM traffic in the mem-bound regime).
    x_bf16 = x.astype(jnp.bfloat16)

    # f32 reference with the same bf16-rounded inputs the kernel sees.
    ref = gauge_layer_ref(x_bf16.astype(jnp.float32).reshape(M, hid_dim),
                          w1_k.astype(jnp.float32), b1_k,
                          w2_k.astype(jnp.float32), b2_k)

    # 1) Resident-weight path (auto-selected for this H).
    out = gauge_layer(x_bf16, w1_k, b1_k, w2_k, b2_k)
    out = jax.block_until_ready(out)
    assert out.shape == (batch, seq, hid_dim)
    assert jnp.allclose(out.reshape(M, hid_dim).astype(jnp.float32), ref,
                        atol=6e-2, rtol=6e-2), "resident path mismatch vs reference"

    # 2) Hidden-dim-tiled fallback (normally only for very large H; forced here to
    #    validate it at small shape).
    out_kt = gauge_layer(x_bf16, w1_k, b1_k, w2_k, b2_k, k_tile=128)
    out_kt = jax.block_until_ready(out_kt)
    assert jnp.allclose(out_kt.reshape(M, hid_dim).astype(jnp.float32), ref,
                        atol=6e-2, rtol=6e-2), "k-tiled path mismatch vs reference"

    print("KERNEL_OK")
</pallas_src>

<mosaic_0001>
module attributes {stable_mosaic.version = 11 : i64} {
  func.func @_gauge_kernel_resident(%arg0: i32, %arg1: memref<8x256xbf16, #tpu.memory_space<vmem>>, %arg2: memref<256x256xbf16, #tpu.memory_space<vmem>>, %arg3: memref<1x256xf32, #tpu.memory_space<vmem>>, %arg4: memref<256x256xbf16, #tpu.memory_space<vmem>>, %arg5: memref<1x256xf32, #tpu.memory_space<vmem>>, %arg6: memref<8x256xbf16, #tpu.memory_space<vmem>>) attributes {dimension_semantics = [#tpu.dimension_semantics<parallel>], iteration_bounds = array<i64: 2>, scalar_prefetch = 0 : i64, scratch_operands = 0 : i64, tpu.core_type = #tpu.core_type<tc>, window_params = [{transform_indices = @transform_0, window_bounds = array<i64: 8, 256>}, {pipeline_mode = #tpu.pipeline_mode<synchronous>, transform_indices = @transform_1, window_bounds = array<i64: 256, 256>}, {pipeline_mode = #tpu.pipeline_mode<synchronous>, transform_indices = @transform_2, window_bounds = array<i64: 1, 256>}, {pipeline_mode = #tpu.pipeline_mode<synchronous>, transform_indices = @transform_3, window_bounds = array<i64: 256, 256>}, {pipeline_mode = #tpu.pipeline_mode<synchronous>, transform_indices = @transform_4, window_bounds = array<i64: 1, 256>}, {transform_indices = @transform_5, window_bounds = array<i64: 8, 256>}]} {
    %c0 = arith.constant 0 : index
    %c0_0 = arith.constant 0 : index
    %0 = vector.load %arg1[%c0, %c0_0] : memref<8x256xbf16, #tpu.memory_space<vmem>>, vector<8x256xbf16>
    %c0_1 = arith.constant 0 : index
    %c0_2 = arith.constant 0 : index
    %1 = vector.load %arg2[%c0_1, %c0_2] : memref<256x256xbf16, #tpu.memory_space<vmem>>, vector<256x256xbf16>
    %cst = arith.constant dense<0.000000e+00> : vector<8x256xf32>
    %2 = tpu.matmul %0, %1, %cst {dimension_numbers = #tpu.dot_dimension_numbers<[1], [0], [0], [1], [0, 0, 1, 1], [], []>} : vector<8x256xbf16>, vector<256x256xbf16>, vector<8x256xf32> -> vector<8x256xf32>
    %c0_3 = arith.constant 0 : index
    %c0_4 = arith.constant 0 : index
    %3 = vector.load %arg3[%c0_3, %c0_4] : memref<1x256xf32, #tpu.memory_space<vmem>>, vector<1x256xf32>
    %4 = vector.broadcast %3 : vector<1x256xf32> to vector<8x256xf32>
    %5 = arith.addf %2, %4 : vector<8x256xf32>
    %cst_5 = arith.constant 5.000000e-01 : f32
    %6 = vector.broadcast %cst_5 : f32 to vector<8x256xf32>
    %7 = arith.mulf %6, %5 : vector<8x256xf32>
    %8 = math.tanh %7 : vector<8x256xf32>
    %cst_6 = arith.constant 5.000000e-01 : f32
    %9 = vector.broadcast %cst_6 : f32 to vector<8x256xf32>
    %10 = arith.mulf %9, %8 : vector<8x256xf32>
    %cst_7 = arith.constant 5.000000e-01 : f32
    %11 = vector.broadcast %cst_7 : f32 to vector<8x256xf32>
    %12 = arith.addf %10, %11 : vector<8x256xf32>
    %13 = arith.mulf %5, %12 : vector<8x256xf32>
    %14 = arith.truncf %13 : vector<8x256xf32> to vector<8x256xbf16>
    %c0_8 = arith.constant 0 : index
    %c0_9 = arith.constant 0 : index
    %15 = vector.load %arg4[%c0_8, %c0_9] : memref<256x256xbf16, #tpu.memory_space<vmem>>, vector<256x256xbf16>
    %cst_10 = arith.constant dense<0.000000e+00> : vector<8x256xf32>
    %16 = tpu.matmul %14, %15, %cst_10 {dimension_numbers = #tpu.dot_dimension_numbers<[1], [0], [0], [1], [0, 0, 1, 1], [], []>} : vector<8x256xbf16>, vector<256x256xbf16>, vector<8x256xf32> -> vector<8x256xf32>
    %c0_11 = arith.constant 0 : index
    %c0_12 = arith.constant 0 : index
    %17 = vector.load %arg5[%c0_11, %c0_12] : memref<1x256xf32, #tpu.memory_space<vmem>>, vector<1x256xf32>
    %18 = vector.broadcast %17 : vector<1x256xf32> to vector<8x256xf32>
    %19 = arith.addf %16, %18 : vector<8x256xf32>
    %20 = arith.extf %0 : vector<8x256xbf16> to vector<8x256xf32>
    %21 = arith.addf %20, %19 : vector<8x256xf32>
    %22 = arith.truncf %21 : vector<8x256xf32> to vector<8x256xbf16>
    %c0_13 = arith.constant 0 : index
    %c0_14 = arith.constant 0 : index
    %23 = vector.load %arg6[%c0_13, %c0_14] : memref<8x256xbf16, #tpu.memory_space<vmem>>, vector<8x256xbf16>
    tpu.vector_store %arg6[%c0_13, %c0_14], %22 {strides = array<i32>} : memref<8x256xbf16, #tpu.memory_space<vmem>>, vector<8x256xbf16>,
    return
  }
  func.func @transform_0(%arg0: i32) -> (i32, i32) {
    %c0_i32 = arith.constant 0 : i32
    %c0_i32_0 = arith.constant 0 : i32
    return %arg0, %c0_i32 : i32, i32
  }
  func.func @transform_1(%arg0: i32) -> (i32, i32) {
    %c0_i32 = arith.constant 0 : i32
    %c0_i32_0 = arith.constant 0 : i32
    %c0_i32_1 = arith.constant 0 : i32
    return %c0_i32, %c0_i32_0 : i32, i32
  }
  func.func @transform_2(%arg0: i32) -> (i32, i32) {
    %c0_i32 = arith.constant 0 : i32
    %c0_i32_0 = arith.constant 0 : i32
    %c0_i32_1 = arith.constant 0 : i32
    return %c0_i32, %c0_i32_0 : i32, i32
  }
  func.func @transform_3(%arg0: i32) -> (i32, i32) {
    %c0_i32 = arith.constant 0 : i32
    %c0_i32_0 = arith.constant 0 : i32
    %c0_i32_1 = arith.constant 0 : i32
    return %c0_i32, %c0_i32_0 : i32, i32
  }
  func.func @transform_4(%arg0: i32) -> (i32, i32) {
    %c0_i32 = arith.constant 0 : i32
    %c0_i32_0 = arith.constant 0 : i32
    %c0_i32_1 = arith.constant 0 : i32
    return %c0_i32, %c0_i32_0 : i32, i32
  }
  func.func @transform_5(%arg0: i32) -> (i32, i32) {
    %c0_i32 = arith.constant 0 : i32
    %c0_i32_0 = arith.constant 0 : i32
    return %arg0, %c0_i32 : i32, i32
  }
}

</mosaic_0001>

<bundles_post_ra>
// kernel: tpu_custom_call.1
= control target key start
LH: loop header
LB: loop body
LE: loop exit
PB: predicated region body
PF: predicated region fallthrough
CT: control target
= control target key end

     0   :  { %10 = vsyncpa [#allocation3], 0  ;;  %s1597_s0 = inlined_call_operand.hbm [shape: bf16[16,256], index: 0, kind: input, shape index: {}]   ;;  %s1598_s1 = inlined_call_operand.hbm [shape: bf16[256,256], index: 1, kind: input, shape index: {}]   ;;  %s1599_s2 = inlined_call_operand.vmem [shape: f32[1,256], index: 2, kind: input, shape index: {}]   ;;  %s1600_s3 = inlined_call_operand.hbm [shape: bf16[256,256], index: 3, kind: input, shape index: {}]   ;;  %s1601_s4 = inlined_call_operand.vmem [shape: f32[1,256], index: 4, kind: input, shape index: {}]   ;;  %s1602_s5 = inlined_call_operand.hbm [shape: bf16[16,256], index: 5, kind: output, shape index: {}]  }
   0x1   :  { %12 = vsyncpa [#allocation3 + $0x1], 0 }
   0x2   :  { %13 = vsyncpa [#allocation6], 0 }
   0x3   :  { %14 = vsyncpa [#allocation4], 0 }
   0x4   :  { %16 = vsyncpa [#allocation4 + $0x1], 0  ;;  %s1350_s18 = smov 0   ;;  %s1352_s19 = smov 0  }
   0x5   :  { %s1354_s20 = smov 0   ;;  %s1356_s21 = smov 0  }
   0x6 LB: > { %s1371_s22 = sadd.s32 4294967295, %s1312_s21   ;;  %s897_s23 = sadd.s32 4294967294, %s1312_s21   ;;  %s1312_s21 = sphi %s1356_s21, %s1622_s21   ;;  %s1308_s20 = sphi %s1354_s20, %s1621_s20   ;;  %s1304_s19 = sphi %s1352_s19, %s1620_s19   ;;  %s1300_s18 = sphi %s1350_s18, %s1619_s18  }
   0x7   : > { %p42_p0 = scmp.ne.s32.totalorder %s1304_s19, %s1300_s18  ;;  %p1603_p1 = scmp.eq.s32.totalorder %s1371_s22, 0 }
   0x8   : > { %p156_p3 = scmp.eq.s32.totalorder %s897_s23, 1  ;;  %p898_p5 = scmp.ge.s32.totalorder %s1312_s21, 1 }
   0x9   : > { %p1380_p4 = por %p1603_p1, %p42_p0  ;;  %p163_p7 = scmp.lt.s32.totalorder %s1312_s21, 3 }
   0xa   : > { %p1385_p6 = por %p156_p3, %p42_p0  ;;  %s1314_s27 = smov [#allocation5]  }
   0xb   : > { %s1606_s24 = scalar_select %p1380_p4, 1, 0 }
   0xc   : > { %s1607_s25 = scalar_select %p1385_p6, 1, 0 }
   0xd   : > { %p1390_p8 = pnand %p898_p5, %p163_p7  ;;  %s175_s28 = sshll.u32 %s1314_s27, 4  ;;  %s1394_s28 = int_to_ptr.vmem [resolvable:$true] %s175_s28 }
   0xe   : > { %s1315_s30 = smov [#allocation7]   ;;  %s1156_s9 = scalar_lea.hbm %s1598_s1, 4096 }
   0xf   : > { %p997_p9 = pneg %p1390_p8  ;;  %s191_s6 = sshll.u32 %s1315_s30, 4  ;;  %s1405_s6 = int_to_ptr.vmem [resolvable:$true] %s191_s6 }
  0x10   : > { %p1157_p12 = scmp.ne.s32.totalorder %s1598_s1, %s1156_s9  ;;  %p1163_p5 = scmp.lt.u32.totalorder %s1156_s9, %s1598_s1 }
  0x11   : > { %p1401_p11 = pnand %p997_p9, %p1603_p1 }
  0x13   : > { %p1158_p13 = pneg %p1401_p11 }
  0x15   : > { %p1159_p0 = pnand %p1158_p13, %p1157_p12 }
  0x17   : > { %p1160_p3 = pneg %p1159_p0 }
  0x19   : > { %p1165_p7 = pnand %p1163_p5, %p1160_p3 }
  0x1b   : > { %1168 = shalt.err (!%p1165_p7)
}
  0x1c   : > { %s1169_s14 = scalar_lea.vmem %s1394_s28, 4096  ;;  %p1177_p2 = scmp.lt.s32.totalorder %s1394_s28, %s1394_s28 }
  0x1d   : > { %p1170_p9 = scmp.ne.s32.totalorder %s1394_s28, %s1169_s14  ;;  %p1178_p12 = scmp.lt.s32.totalorder %s1169_s14, %s1169_s14 }
  0x1f   : > { %p1172_p10 = pnand %p1170_p9, %p1158_p13  ;;  %p1179_p0 = por %p1178_p12, %p1177_p2 }
  0x21   : > { %p1173_p1 = pneg %p1172_p10 }
  0x23   : > { %p1180_p6 = pnand %p1179_p0, %p1173_p1 }
  0x25   : > { %1183 = shalt.err (!%p1180_p6)
}
  0x26   : > { %s1316_s15 = smov 128   ;;  %s1317_s16 = smov 8  }
  0x27   : > { %1000 = dma.hbm_to_vmem [thread:$0]  (!%p1401_p11), %s1598_s1, 4096, %s1394_s28, [#allocation6], %s1316_s15, %s1316_s15, %s1317_s16  }
  0x28   : > { %s1184_s7 = scalar_lea.hbm %s1600_s3, 4096 }
  0x29   : > { %p1185_p2 = scmp.ne.s32.totalorder %s1600_s3, %s1184_s7  ;;  %p1191_p10 = scmp.lt.u32.totalorder %s1184_s7, %s1600_s3 }
  0x2b   : > { %p1187_p1 = pnand %p1185_p2, %p1158_p13 }
  0x2d   : > { %p1188_p6 = pneg %p1187_p1 }
  0x2f   : > { %p1193_p3 = pnand %p1191_p10, %p1188_p6 }
  0x31   : > { %1196 = shalt.err (!%p1193_p3)
}
  0x32   : > { %s1197_s28 = scalar_lea.vmem %s1405_s6, 4096  ;;  %p1205_p12 = scmp.lt.s32.totalorder %s1405_s6, %s1405_s6 }
  0x33   : > { %p1198_p5 = scmp.ne.s32.totalorder %s1405_s6, %s1197_s28  ;;  %p1206_p0 = scmp.lt.s32.totalorder %s1197_s28, %s1197_s28 }
  0x35   : > { %p1200_p7 = pnand %p1198_p5, %p1158_p13  ;;  %p1207_p2 = por %p1206_p0, %p1205_p12 }
  0x37   : > { %p1201_p9 = pneg %p1200_p7 }
  0x39   : > { %p1208_p1 = pnand %p1207_p2, %p1201_p9 }
  0x3b   : > { %1211 = shalt.err (!%p1208_p1)
}
  0x3c   : > { %1003 = dma.hbm_to_vmem [thread:$0]  (!%p1401_p11), %s1600_s3, 4096, %s1405_s6, [#allocation6], %s1316_s15, %s1316_s15, %s1317_s16  }
  0x3d   : > { %s1460_s14 = sadd.s32 1, %s1312_s21   ;;  %s29_s29 = sadd.s32 1, %s1308_s20 }
  0x3e   : > { %s26_s17 = ssub.s32 %s1312_s21, %s1460_s14  ;;  %p36_p13 = scmp.ne.s32.totalorder %s1308_s20, %s1304_s19 }
  0x3f   : > { %p27_p6 = scmp.eq.s32.totalorder %s26_s17, 0  ;;  %p37_p10 = scmp.eq.s32.totalorder %s1312_s21, 0 }
  0x40   : > { %p1610_p3 = scmp.eq.s32.totalorder %s1371_s22, 1  ;;  %p1014_p7 = scmp.lt.s32.totalorder %s1312_s21, 2 }
  0x41   : > { %s1476_s27 = scalar_select %p27_p6, %s1308_s20, %s29_s29  }
  0x42   : > { %p1470_p5 = por %p1610_p3, %p36_p13  ;;  %p38_p9 = por %p37_p10, %p36_p13 }
  0x43   : > { %s208_s30 = sand.u32 1, %s1308_s20   ;;  %s982_s6 = sshll.u32 %s1312_s21, 7 }
  0x44   : > { %s1611_s23 = scalar_select %p1470_p5, 1, 0 }
  0x45   : > { %s902_s7 = sshll.u32 %s208_s30, 3  ;;  %s1483_s8 = scalar_lea.hbm %s1597_s0, %s982_s6 }
  0x46   : > { %s212_s9 = scalar_lea.vmem [#allocation2], %s902_s7  ;;  %p1487_p11 = pnand %p1014_p7, %p38_p9 }
  0x47   : > { %s220_s10 = sshll.u32 %s212_s9, 4  ;;  %s209_s28 = scalar_lea.sflag [#allocation3], %s208_s30  ;;  %s1485_s10 = int_to_ptr.vmem [resolvable:$true] %s220_s10 }
  0x48   : > { %s1212_s12 = scalar_lea.hbm %s1483_s8, 128  ;;  %p1214_p0 = pneg %p1487_p11 }
  0x49   : > { %p1213_p12 = scmp.ne.s32.totalorder %s1483_s8, %s1212_s12  ;;  %s1217_s17 = scalar_lea.hbm %s1597_s0, 256 }
  0x4a   : > { %p1218_p13 = scmp.lt.u32.totalorder %s1483_s8, %s1597_s0  ;;  %p1219_p6 = scmp.lt.u32.totalorder %s1217_s17, %s1212_s12 }
  0x4b   : > { %p1215_p2 = pnand %p1214_p0, %p1213_p12  ;;  %p1221_p3 = scmp.lt.u32.totalorder %s1212_s12, %s1483_s8 }
  0x4c   : > { %p1220_p10 = por %p1219_p6, %p1218_p13 }
  0x4d   : > { %p1216_p1 = pneg %p1215_p2 }
  0x4e   : > { %p1222_p7 = por %p1221_p3, %p1220_p10 }
  0x50   : > { %p1223_p9 = pnand %p1222_p7, %p1216_p1 }
  0x52   : > { %1226 = shalt.err (!%p1223_p9)
}
  0x53   : > { %s1227_s30 = scalar_lea.vmem %s1485_s10, 128  ;;  %s1318_s15 = smov [#allocation2]  }
  0x54   : > { %p1228_p12 = scmp.ne.s32.totalorder %s1485_s10, %s1227_s30  ;;  %s1232_s16 = sshll.u32 %s1318_s15, 4  ;;  %s1233_s16 = int_to_ptr.vmem [resolvable:$false] %s1232_s16 }
  0x55   : > { %s1234_s9 = scalar_lea.vmem %s1233_s16, 256  ;;  %p1235_p4 = scmp.lt.s32.totalorder %s1485_s10, %s1233_s16 }
  0x56   : > { %p1230_p2 = pnand %p1228_p12, %p1214_p0  ;;  %p1236_p13 = scmp.lt.s32.totalorder %s1234_s9, %s1227_s30 }
  0x58   : > { %p1231_p5 = pneg %p1230_p2  ;;  %p1237_p6 = por %p1236_p13, %p1235_p4 }
  0x5a   : > { %p1238_p10 = pnand %p1237_p6, %p1231_p5 }
  0x5c   : > { %1241 = shalt.err (!%p1238_p10)
}
  0x5d   : > { %1007 = dma.hbm_to_vmem [thread:$0]  (!%p1487_p11), %s1483_s8, 128, %s1485_s10, %s209_s28  }
  0x5e   : > { %229 = sbr.rel (%p1390_p8) target bundleno = 640 (0x280), region = 40  ;;  %s1519_s12 = sand.u32 (!%p1390_p8), 1, %s1304_s19  }
  0x5f   : > { %s906_s13 = sshll.u32 (!%p1390_p8), %s1519_s12, 3  ;;  %s232_s29 = scalar_lea.sflag (!%p1390_p8), [#allocation3], %s1519_s12 }
  0x60   : > { %s235_s17 = scalar_lea.vmem (!%p1390_p8), [#allocation2], %s906_s13  ;;  %p1613_p4 = scmp.ne.s32.totalorder (!%p1390_p8), %s1606_s24, 0 }
  0x65   : > { %1287 = dma.done.wait (%p1613_p4), %s232_s29, 128  }
  0x66   : > { %1289 = vsyncadd (%p1613_p4), %s232_s29, 4294967168  ;;  %p1614_p5 = scmp.eq.s32.totalorder %s1371_s22, 0 }
  0x68   : > { %1291 = dma.done.wait (%p1614_p5), [#allocation6], 8192   ;;  %p1615_p8 = pmov %p1614_p5 }
  0x69   : > { %v1054_v0 = vld [vmem:[#allocation5 + $0x4] ss:$8 sps:$4 sm:$0xff]   ;;  %v1056_v1 = vld [vmem:[#allocation5] ss:$8 sps:$4 sm:$0xff]   ;;  %v1057_v2 = vld [vmem:[#allocation5 + $0x14] ss:$8 sps:$4 sm:$0xff]  }
  0x6a   : > { %1293 = vsyncadd (%p1615_p8), [#allocation6], 4294959104  ;;  %482 = vmatprep.subr.bf16.mxu0 %v1054_v0  ;;  %v1059_v3 = vld [vmem:[#allocation5 + $0x10] ss:$8 sps:$4 sm:$0xff]   ;;  %v1060_v4 = vld [vmem:[#allocation5 + $0x24] ss:$8 sps:$4 sm:$0xff]  }
  0x6b   : > { %483 = vmatpush1.bf16.msra.mxu0 %v1056_v1  ;;  %v1062_v5 = vld [vmem:[#allocation5 + $0x20] ss:$8 sps:$4 sm:$0xff]   ;;  %v1063_v6 = vld [vmem:[#allocation5 + $0x34] ss:$8 sps:$4 sm:$0xff]   ;;  %v1065_v7 = vld [vmem:[#allocation5 + $0x30] ss:$8 sps:$4 sm:$0xff]  }
  0x6c   : > { %484 = vmatprep.subr.bf16.mxu0 %v1057_v2  ;;  %v1066_v8 = vld [vmem:[#allocation5 + $0x44] ss:$8 sps:$4 sm:$0xff]   ;;  %v1068_v9 = vld [vmem:[#allocation5 + $0x40] ss:$8 sps:$4 sm:$0xff]   ;;  %v1069_v10 = vld [vmem:[#allocation5 + $0x54] ss:$8 sps:$4 sm:$0xff]  }
  0x6d   : > { %v1071_v11 = vld [vmem:[#allocation5 + $0x50] ss:$8 sps:$4 sm:$0xff]   ;;  %v1072_v12 = vld [vmem:[#allocation5 + $0x64] ss:$8 sps:$4 sm:$0xff]   ;;  %v1074_v13 = vld [vmem:[#allocation5 + $0x60] ss:$8 sps:$4 sm:$0xff]  }
  0x6e   : > { %v1533_v14 = vld [vmem:[%s235_s17] sm:$0xff]  ;;  %v1104_v16 = vld [vmem:[#allocation7 + $0x4] ss:$8 sps:$4 sm:$0xff]   ;;  %v1106_v17 = vld [vmem:[#allocation7] ss:$8 sps:$4 sm:$0xff]   ;;  %s984_s11 = sshll.u32 %s1371_s22, 7 }
  0x6f   : > { %485 = vmatpush1.bf16.msra.mxu0 %v1059_v3  ;;  %v911_v15 = vcombine.high %v1533_v14, %v1533_v14  ;;  %v1107_v18 = vld [vmem:[#allocation7 + $0x14] ss:$8 sps:$4 sm:$0xff]   ;;  %739 = vmatprep.subr.bf16.mxu1 %v1104_v16  ;;  %v1077_v20 = vld [vmem:[#allocation5 + $0x70] ss:$8 sps:$4 sm:$0xff]   ;;  %v1110_v22 = vld [vmem:[#allocation7 + $0x24] ss:$8 sps:$4 sm:$0xff]   ;;  %v910_v54 = vcombine.low %v1533_v14, %v1533_v14  ;;  %v305_v3 = vlaneseq  ;;  %s1553_s15 = scalar_lea.hbm %s1602_s5, %s984_s11 }
  0x70   : > { %486 = vmatprep.subr.bf16.mxu0 %v1060_v4  ;;  %v1075_v19 = vld [vmem:[#allocation5 + $0x74] ss:$8 sps:$4 sm:$0xff]   ;;  %740 = vmatpush1.bf16.msra.mxu1 %v1106_v17  ;;  %v1109_v21 = vld [vmem:[#allocation7 + $0x10] ss:$8 sps:$4 sm:$0xff]   ;;  %v1078_v23 = vld [vmem:[#allocation5 + $0x84] ss:$8 sps:$4 sm:$0xff]  }
  0x71   : > { %514 = vmatprep.mubr.bf16.mxu0 %v911_v15  ;;  %741 = vmatprep.subr.bf16.mxu1 %v1107_v18  ;;  %v1080_v24 = vld [vmem:[#allocation5 + $0x80] ss:$8 sps:$4 sm:$0xff]   ;;  %v1113_v26 = vld [vmem:[#allocation7 + $0x34] ss:$8 sps:$4 sm:$0xff]   ;;  %v1083_v28 = vld [vmem:[#allocation5 + $0x90] ss:$8 sps:$4 sm:$0xff]  }
  0x72   : > { %v1112_v25 = vld [vmem:[#allocation7 + $0x20] ss:$8 sps:$4 sm:$0xff]   ;;  %v1081_v27 = vld [vmem:[#allocation5 + $0x94] ss:$8 sps:$4 sm:$0xff]   ;;  %v1084_v29 = vld [vmem:[#allocation5 + $0xa4] ss:$8 sps:$4 sm:$0xff]  }
  0x73   : > { %487 = vmatpush1.bf16.msra.mxu0 %v1062_v5  ;;  %v1115_v30 = vld [vmem:[#allocation7 + $0x30] ss:$8 sps:$4 sm:$0xff]   ;;  %v1116_v31 = vld [vmem:[#allocation7 + $0x44] ss:$8 sps:$4 sm:$0xff]   ;;  %v1118_v32 = vld [vmem:[#allocation7 + $0x40] ss:$8 sps:$4 sm:$0xff]  }
  0x74   : > { %488 = vmatprep.subr.bf16.mxu0 %v1063_v6  ;;  %742 = vmatpush1.bf16.msra.mxu1 %v1109_v21  ;;  %v1086_v33 = vld [vmem:[#allocation5 + $0xa0] ss:$8 sps:$4 sm:$0xff]   ;;  %v1119_v34 = vld [vmem:[#allocation7 + $0x54] ss:$8 sps:$4 sm:$0xff]   ;;  %v1121_v36 = vld [vmem:[#allocation7 + $0x50] ss:$8 sps:$4 sm:$0xff]  }
  0x75   : > { %743 = vmatprep.subr.bf16.mxu1 %v1110_v22  ;;  %v1087_v35 = vld [vmem:[#allocation5 + $0xb4] ss:$8 sps:$4 sm:$0xff]   ;;  %v1089_v37 = vld [vmem:[#allocation5 + $0xb0] ss:$8 sps:$4 sm:$0xff]   ;;  %v1122_v38 = vld [vmem:[#allocation7 + $0x64] ss:$8 sps:$4 sm:$0xff]  }
  0x76   : > { %v1090_v39 = vld [vmem:[#allocation5 + $0xc4] ss:$8 sps:$4 sm:$0xff]   ;;  %v1124_v40 = vld [vmem:[#allocation7 + $0x60] ss:$8 sps:$4 sm:$0xff]   ;;  %v1125_v42 = vld [vmem:[#allocation7 + $0x74] ss:$8 sps:$4 sm:$0xff]  }
  0x77   : > { %489 = vmatpush1.bf16.msra.mxu0 %v1065_v7  ;;  %v1092_v41 = vld [vmem:[#allocation5 + $0xc0] ss:$8 sps:$4 sm:$0xff]   ;;  %v1093_v43 = vld [vmem:[#allocation5 + $0xd4] ss:$8 sps:$4 sm:$0xff]   ;;  %v1127_v44 = vld [vmem:[#allocation7 + $0x70] ss:$8 sps:$4 sm:$0xff]  }
  0x78   : > { %490 = vmatprep.subr.bf16.mxu0 %v1066_v8  ;;  %744 = vmatpush1.bf16.msra.mxu1 %v1112_v25  ;;  %v1095_v45 = vld [vmem:[#allocation5 + $0xd0] ss:$8 sps:$4 sm:$0xff]   ;;  %v1128_v46 = vld [vmem:[#allocation7 + $0x84] ss:$8 sps:$4 sm:$0xff]   ;;  %v1130_v48 = vld [vmem:[#allocation7 + $0x80] ss:$8 sps:$4 sm:$0xff]  }
  0x79   : > { %745 = vmatprep.subr.bf16.mxu1 %v1113_v26  ;;  %v1096_v47 = vld [vmem:[#allocation5 + $0xe4] ss:$8 sps:$4 sm:$0xff]   ;;  %v1098_v49 = vld [vmem:[#allocation5 + $0xe0] ss:$8 sps:$4 sm:$0xff]   ;;  %v1131_v50 = vld [vmem:[#allocation7 + $0x94] ss:$8 sps:$4 sm:$0xff]  }
  0x7a   : > { %v1099_v51 = vld [vmem:[#allocation5 + $0xf4] ss:$8 sps:$4 sm:$0xff]   ;;  %v1133_v52 = vld [vmem:[#allocation7 + $0x90] ss:$8 sps:$4 sm:$0xff]   ;;  %v1134_v55 = vld [vmem:[#allocation7 + $0xa4] ss:$8 sps:$4 sm:$0xff]  }
  0x7b   : > { %491 = vmatpush1.bf16.msra.mxu0 %v1068_v9  ;;  %v1101_v53 = vld [vmem:[#allocation5 + $0xf0] ss:$8 sps:$4 sm:$0xff]   ;;  %v1136_v56 = vld [vmem:[#allocation7 + $0xa0] ss:$8 sps:$4 sm:$0xff]   ;;  %v1137_v57 = vld [vmem:[#allocation7 + $0xb4] ss:$8 sps:$4 sm:$0xff]  }
  0x7c   : > { %492 = vmatprep.subr.bf16.mxu0 %v1069_v10  ;;  %746 = vmatpush1.bf16.msra.mxu1 %v1115_v30  ;;  %v1139_v58 = vld [vmem:[#allocation7 + $0xb0] ss:$8 sps:$4 sm:$0xff]   ;;  %v1140_v59 = vld [vmem:[#allocation7 + $0xc4] ss:$8 sps:$4 sm:$0xff]   ;;  %v1142_v60 = vld [vmem:[#allocation7 + $0xc0] ss:$8 sps:$4 sm:$0xff]  }
  0x7d   : > { %747 = vmatprep.subr.bf16.mxu1 %v1116_v31  ;;  %v1143_v61 = vld [vmem:[#allocation7 + $0xd4] ss:$8 sps:$4 sm:$0xff]   ;;  %v1145_v62 = vld [vmem:[#allocation7 + $0xd0] ss:$8 sps:$4 sm:$0xff]   ;;  %v1146_v63 = vld [vmem:[#allocation7 + $0xe4] ss:$8 sps:$4 sm:$0xff]  }
  0x7e   : > { %v1148_v0 = vld [vmem:[#allocation7 + $0xe0] ss:$8 sps:$4 sm:$0xff]   ;;  %v1149_v1 = vld [vmem:[#allocation7 + $0xf4] ss:$8 sps:$4 sm:$0xff]   ;;  %v1151_v2 = vld [vmem:[#allocation7 + $0xf0] ss:$8 sps:$4 sm:$0xff]  }
  0x7f   : > { %493 = vmatpush1.bf16.msra.mxu0 %v1071_v11  ;;  %v306_v4 = vshrl.u32 %v305_v3, 7  ;;  %v303_v6 = vld [vmem:[%s1599_s2] sm:$0x3]  ;;  %s269_s28 = scalar_lea.vmem [#allocation8], %s906_s13  ;;  %s794_s16 = scalar_lea.sflag [#allocation4], %s1519_s12 }
  0x80   : > { %494 = vmatprep.subr.bf16.mxu0 %v1072_v12  ;;  %748 = vmatpush1.bf16.msra.mxu1 %v1118_v32  ;;  %v780_v32 = vunpack.c.l.bf16 %v1533_v14  ;;  %s808_s7 = sshll.u32 %s269_s28, 4  ;;  %p1616_p0 = scmp.ne.s32.totalorder %s1611_s23, 0  ;;  %s1555_s7 = int_to_ptr.vmem [resolvable:$true] %s808_s7 }
  0x81   : > { %749 = vmatprep.subr.bf16.mxu1 %v1119_v34  ;;  %v307_v5 = vsub.s32 0, %v306_v4  ;;  %v311_v7 = vsub.s32 1, %v306_v4  ;;  %v781_v34 = vunpack.c.h.bf16 %v1533_v14  ;;  %s1242_s9 = scalar_lea.vmem %s1555_s7, 128  ;;  %s1319_s22 = smov [#allocation8]  }
  0x82   : > { %p1243_p11 = scmp.ne.s32.totalorder %s1555_s7, %s1242_s9  ;;  %s1246_s13 = sshll.u32 %s1319_s22, 4  ;;  %s1247_s13 = int_to_ptr.vmem [resolvable:$false] %s1246_s13 }
  0x83   : > { %495 = vmatpush1.bf16.msra.mxu0 %v1074_v13  ;;  %v308_v8 = vrot.slane %v303_v6, %v307_v5  ;;  %v312_v9 = vrot.slane %v303_v6, %v311_v7  ;;  %s1248_s29 = scalar_lea.vmem %s1247_s13, 256  ;;  %p1249_p7 = scmp.lt.s32.totalorder %s1555_s7, %s1247_s13 }
  0x84   : > { %496 = vmatprep.subr.bf16.mxu0 %v1075_v19  ;;  %750 = vmatpush1.bf16.msra.mxu1 %v1121_v36  ;;  %p1244_p1 = pnand %p1243_p11, %p1616_p0  ;;  %p1250_p9 = scmp.lt.s32.totalorder %s1248_s29, %s1242_s9 }
  0x85   : > { %751 = vmatprep.subr.bf16.mxu1 %v1122_v38 }
  0x86   : > { %p1245_p3 = pneg %p1244_p1  ;;  %p1251_p12 = por %p1250_p9, %p1249_p7 }
  0x87   : > { %497 = vmatpush1.bf16.msra.mxu0 %v1077_v20 }
  0x88   : > { %498 = vmatprep.subr.bf16.mxu0 %v1078_v23  ;;  %752 = vmatpush1.bf16.msra.mxu1 %v1124_v40  ;;  %p1252_p2 = pnand %p1251_p12, %p1245_p3 }
  0x89   : > { %753 = vmatprep.subr.bf16.mxu1 %v1125_v42 }
  0x8b   : > { %499 = vmatpush1.bf16.msra.mxu0 %v1080_v24 }
  0x8c   : > { %500 = vmatprep.subr.bf16.mxu0 %v1081_v27  ;;  %754 = vmatpush1.bf16.msra.mxu1 %v1127_v44 }
  0x8d   : > { %755 = vmatprep.subr.bf16.mxu1 %v1128_v46 }
  0x8f   : > { %501 = vmatpush1.bf16.msra.mxu0 %v1083_v28 }
  0x90   : > { %502 = vmatprep.subr.bf16.mxu0 %v1084_v29  ;;  %756 = vmatpush1.bf16.msra.mxu1 %v1130_v48  ;;  %v567_v29 = vld [vmem:[%s1601_s4] sm:$0x3] }
  0x91   : > { %757 = vmatprep.subr.bf16.mxu1 %v1131_v50  ;;  %v572_v30 = vrot.slane %v567_v29, %v307_v5  ;;  %v576_v31 = vrot.slane %v567_v29, %v311_v7 }
  0x93   : > { %503 = vmatpush1.bf16.msra.mxu0 %v1086_v33 }
  0x94   : > { %504 = vmatprep.subr.bf16.mxu0 %v1087_v35  ;;  %758 = vmatpush1.bf16.msra.mxu1 %v1133_v52 }
  0x95   : > { %759 = vmatprep.subr.bf16.mxu1 %v1134_v55 }
  0x97   : > { %505 = vmatpush1.bf16.msra.mxu0 %v1089_v37 }
  0x98   : > { %506 = vmatprep.subr.bf16.mxu0 %v1090_v39  ;;  %760 = vmatpush1.bf16.msra.mxu1 %v1136_v56 }
  0x99   : > { %761 = vmatprep.subr.bf16.mxu1 %v1137_v57 }
  0x9b   : > { %507 = vmatpush1.bf16.msra.mxu0 %v1092_v41 }
  0x9c   : > { %508 = vmatprep.subr.bf16.mxu0 %v1093_v43  ;;  %762 = vmatpush1.bf16.msra.mxu1 %v1139_v58 }
  0x9d   : > { %763 = vmatprep.subr.bf16.mxu1 %v1140_v59 }
  0x9f   : > { %509 = vmatpush1.bf16.msra.mxu0 %v1095_v45 }
  0xa0   : > { %510 = vmatprep.subr.bf16.mxu0 %v1096_v47  ;;  %764 = vmatpush1.bf16.msra.mxu1 %v1142_v60 }
  0xa1   : > { %765 = vmatprep.subr.bf16.mxu1 %v1143_v61 }
  0xa3   : > { %511 = vmatpush1.bf16.msra.mxu0 %v1098_v49 }
  0xa4   : > { %512 = vmatprep.subr.bf16.mxu0 %v1099_v51  ;;  %766 = vmatpush1.bf16.msra.mxu1 %v1145_v62 }
  0xa5   : > { %767 = vmatprep.subr.bf16.mxu1 %v1146_v63 }
  0xa7   : > { %513 = vmatpush1.bf16.msra.mxu0 %v1101_v53 }
  0xa8   : > { %768 = vmatpush1.bf16.msra.mxu1 %v1148_v0 }
  0xa9   : > { %769 = vmatprep.subr.bf16.mxu1 %v1149_v1 }
  0xaa   : > { %515 = vmatmul.mubr.bf16.vlgmr.msra.gmra.mrb[0].mxu0 %v910_v54 }
  0xac   : > { %770 = vmatpush1.bf16.msra.mxu1 %v1151_v2 }
 0x17d   : > { %v516_v10 = vpop.f32.mrb[0].mxu0 }
 0x17e   : > { %v517_v11 = vadd.f32 %v516_v10, %v308_v8  ;;  %v518_v12 = vpop.f32.mrb[1].mxu0 }
 0x17f   : > { %v519_v13 = vadd.f32 %v518_v12, %v312_v9  ;;  %v520_v15 = vpop.f32.mrb[2].mxu0 }
 0x180   : > { %v523_v16 = vmul.f32 0.5, %v517_v11  ;;  %v521_v17 = vpop.f32.mrb[3].mxu0 }
 0x181   : > { %v524_v18 = vmul.f32 0.5, %v519_v13 }
 0x182   : > { %1152 = vtanh.f32 %v523_v16 }
 0x183   : > { %1154 = vtanh.f32 %v524_v18 }
 0x18c   : > { %v1153_v19 = vpop.eup %1152 }
 0x18d   : > { %v1155_v20 = vpop.eup %1154  ;;  %v527_v21 = vmul.f32 0.5, %v1153_v19 }
 0x18e   : > { %v528_v22 = vmul.f32 0.5, %v1155_v20 }
 0x18f   : > { %v529_v23 = vadd.f32 0.5, %v527_v21 }
 0x190   : > { %v530_v24 = vadd.f32 0.5, %v528_v22 }
 0x191   : > { %v531_v25 = vmul.f32 %v529_v23, %v517_v11 }
 0x192   : > { %v532_v26 = vmul.f32 %v530_v24, %v519_v13 }
 0x193   : > { %v533_v28 = vpack.c.bf16 %v531_v25, %v531_v25 }
 0x194   : > { %v534_v27 = vpack.c.bf16 %v532_v26, %v532_v26 }
 0x196   : > { %771 = vmatprep.mubr.bf16.mxu1 %v534_v27 }
 0x197   : > { %772 = vmatmul.mubr.bf16.vlgmr.msra.gmra.mrb[0].mxu1 %v533_v28 }
 0x26a   : > { %v773_v33 = vpop.f32.mrb[0].mxu1 }
 0x26b   : > { %v774_v35 = vadd.f32 %v773_v33, %v572_v30  ;;  %v775_v36 = vpop.f32.mrb[1].mxu1 }
 0x26c   : > { %v776_v37 = vadd.f32 %v775_v36, %v576_v31  ;;  %v777_v38 = vpop.f32.mrb[2].mxu1 }
 0x26d   : > { %v782_v39 = vadd.f32 %v780_v32, %v774_v35  ;;  %v778_v40 = vpop.f32.mrb[3].mxu1 }
 0x26e   : > { %v783_v41 = vadd.f32 %v781_v34, %v776_v37 }
 0x270   : > { %v983_v42 = vpack.c.bf16 %v783_v41, %v782_v39 }
 0x272   : > { %792 = vst [vmem:[%s269_s28] sm:$0xff] %v983_v42 }
 0x273   : > { %1255 = shalt.err (!%p1252_p2)
}
 0x274   : > { %s1256_s12 = scalar_lea.hbm %s1553_s15, 128  ;;  %s1260_s26 = scalar_lea.hbm %s1602_s5, 256 }
 0x275   : > { %p1257_p13 = scmp.ne.s32.totalorder %s1553_s15, %s1256_s12  ;;  %p1261_p4 = scmp.lt.u32.totalorder %s1553_s15, %s1602_s5 }
 0x276   : > { %p1262_p5 = scmp.lt.u32.totalorder %s1260_s26, %s1256_s12  ;;  %p1264_p11 = scmp.lt.u32.totalorder %s1256_s12, %s1553_s15 }
 0x277   : > { %p1258_p6 = pnand %p1257_p13, %p1616_p0 }
 0x278   : > { %p1263_p8 = por %p1262_p5, %p1261_p4 }
 0x279   : > { %p1259_p10 = pneg %p1258_p6 }
 0x27a   : > { %p1265_p1 = por %p1264_p11, %p1263_p8 }
 0x27c   : > { %p1266_p3 = pnand %p1265_p1, %p1259_p10 }
 0x27e   : > { %1269 = shalt.err (!%p1266_p3)
}
 0x27f   : > { %995 = dma.vmem_to_hbm [thread:$0]  (%p1616_p0), %s1555_s7, 128, %s1553_s15, %s794_s16  }
 0x280 PF: > { %s820_s11 = sand.u32 1, %s1300_s18   ;;  %p1617_p7 = scmp.ne.s32.totalorder %s1607_s25, 0 }
 0x281   : > { %p1618_p9 = scmp.ge.s32.totalorder %s1312_s21, 2  ;;  %s821_s28 = scalar_lea.sflag [#allocation4], %s820_s11 }
 0x283   : > { %p1009_p12 = pnand %p1618_p9, %p1617_p7 }
 0x285   : > { %1295 = dma.done.wait (!%p1009_p12), %s821_s28, 128  }
 0x286   : > { %1297 = vsyncadd (!%p1009_p12), %s821_s28, 4294967168  ;;  %p19_p2 = scmp.ge.s32.totalorder %s1460_s14, 4   ;;  %s1619_s18 = smov %s1304_s19 }
 0x287   : > { %s1620_s19 = smov %s1308_s20  ;;  %s1621_s20 = smov %s1476_s27 }
 0x288   : > { %s1622_s21 = smov %s1460_s14  ;;  %21 = sbr.rel (!%p19_p2) target bundleno = 6 (0x6), region = 93 }
 0x28f   :  { %826 = vsyncpa [#allocation3], 1 }
 0x290   :  { %828 = vsyncpa [#allocation3 + $0x1], 1 }
 0x291   :  { %829 = vsyncpa [#allocation6], 1 }
 0x292   :  { %830 = vsyncpa [#allocation4], 1 }
 0x293   :  { %832 = vsyncpa [#allocation4 + $0x1], 1 }

</bundles_post_ra>
